<compile_context>
chip_gen: v7x
topology: tpu7x:2x2x1
jax: 0.10.0
libtpu: 0.0.40
codegen_flags: <defaults>
</compile_context>

<pallas_src>
import functools
from math import sqrt

import jax
import jax.numpy as jnp
from jax.experimental import pallas as pl
from jax.experimental.pallas import tpu as pltpu

LANES = 128
SUBLANES = 8
ALIGN = SUBLANES * LANES  # 1024 elements = one minimal (8,128) slab


def _agm_kernel(o_ref, t_ref, out_ref, *, a, rows, tile_rows,
                steps_per_partial, needs_mask, first_ragged_block):
    p = pl.program_id(0)          # partial index ("parallel")
    j = pl.program_id(1)          # step within partial ("arbitrary")

    @pl.when(j == 0)
    def _():
        out_ref[...] = jnp.zeros_like(out_ref)

    # Cast in-kernel (free on the VPU); inputs stream in native dtype.
    o = o_ref[...].astype(jnp.float32)
    t = t_ref[...].astype(jnp.float32)

    # sigma = sqrt(2)/2  =>  sigma^2 = 0.5  =>  temp = -(o-t)^2 * 0.25
    diff = o - t
    value = 1.0 - jnp.exp(diff * diff * jnp.float32(-0.25))
    # `diff > 0` == `o > t` (finite and NaN inputs alike); lets o/t vregs die
    # immediately after the subtraction.
    wv = jnp.where(diff > 0, jnp.float32(2.0 * a), jnp.float32(2.0 - 2.0 * a)) * value

    def collapse(x):
        # (tile_rows,128) -> (8,128): layout-preserving sublane split + vector
        # adds; keeps the running accumulator at a single vreg.
        return jnp.sum(x.reshape(tile_rows // SUBLANES, SUBLANES, LANES), axis=0)

    if needs_mask:
        block_idx = p * steps_per_partial + j

        # Full blocks: no mask work at all (the common case).
        @pl.when(block_idx < first_ragged_block)
        def _():
            out_ref[...] += collapse(wv)

        # Tail blocks: ragged last block and/or clamped duplicated tiles.
        # jnp.where (not a multiply) is NaN-safe w.r.t. garbage rows.
        @pl.when(block_idx >= first_ragged_block)
        def _():
            row_in_tile = jax.lax.broadcasted_iota(jnp.int32, (tile_rows, LANES), 0)
            global_row = block_idx * tile_rows + row_in_tile
            out_ref[...] += collapse(
                jnp.where(global_row < rows, wv, jnp.float32(0.0)))
    else:
        out_ref[...] += collapse(wv)


def _weighted_value(o, t, a):
    """Plain-jnp elementwise body (used for the tiny unaligned tail)."""
    o = o.astype(jnp.float32)
    t = t.astype(jnp.float32)
    diff = o - t
    value = 1.0 - jnp.exp(diff * diff * jnp.float32(-0.25))
    return jnp.where(diff > 0, jnp.float32(2.0 * a), jnp.float32(2.0 - 2.0 * a)) * value


def _chip_defaults(dtype):
    """(tile_rows, num_partials) from chip generation and input dtype width."""
    tile_rows, num_partials = 1024, 1          # v5e / v6e: single TensorCore
    try:
        kind = jax.devices()[0].device_kind.lower()
        if "v7" in kind:                       # v7x: 2 TCs, faster HBM
            tile_rows, num_partials = 2048, 2
    except Exception:  # pragma: no cover - device query is best-effort only
        pass
    # Native-dtype streaming: keep ~constant bytes per step for narrow dtypes.
    itemsize = jnp.dtype(dtype).itemsize
    if itemsize < 4:
        tile_rows *= 4 // itemsize
    return tile_rows, num_partials


def asymmetric_gaussian_mse(outputs, targets, a=0.1, tile_rows=None,
                            num_partials=None):
    assert outputs.shape == targets.shape
    n_elems = outputs.size
    if n_elems == 0:
        # torch.mean of an empty tensor is NaN.
        return jnp.float32(float("nan"))

    d_tile_rows, d_partials = _chip_defaults(outputs.dtype)
    if tile_rows is None:
        tile_rows = d_tile_rows
    if num_partials is None:
        num_partials = d_partials

    # Keep native dtype (no wrapper-side cast); flatten to a lane-dense slab.
    o_flat = jnp.ravel(outputs)
    t_flat = jnp.ravel(targets)

    # Stream only the 1024-aligned prefix through the kernel; the remainder
    # (< 1024 elements) is folded in with a tiny plain-jnp partial sum instead
    # of jnp.pad-ing (and re-writing) both full tensors in HBM.
    main = (n_elems // ALIGN) * ALIGN
    rem = n_elems - main

    total = jnp.float32(0.0)

    if main:
        rows = main // LANES                          # multiple of 8
        tile_rows = max(SUBLANES, (min(tile_rows, rows) // SUBLANES) * SUBLANES)
        total_steps = pl.cdiv(rows, tile_rows)

        # Split the row stream across partials (megacore on v7x; harmless and
        # defaulted to 1 on single-TC v5e/v6e).
        n_part = max(1, min(num_partials, total_steps))
        steps_per_partial = pl.cdiv(total_steps, n_part)

        if rem:
            o_main = jax.lax.slice(o_flat, (0,), (main,))
            t_main = jax.lax.slice(t_flat, (0,), (main,))
        else:
            o_main, t_main = o_flat, t_flat
        o2d = o_main.reshape(rows, LANES)
        t2d = t_main.reshape(rows, LANES)

        # Mask only when logical block coverage exceeds the data rows
        # (ragged last block and/or duplicated clamped tail tiles).
        needs_mask = rows != (tile_rows * steps_per_partial * n_part)
        first_ragged_block = rows // tile_rows
        last_block = total_steps - 1

        def in_map(p, j):
            # Clamp so duplicated tail tiles never DMA out of bounds; their
            # contribution is zeroed by the in-kernel tail-block mask.
            return (jnp.minimum(p * steps_per_partial + j, last_block), 0)

        kernel = functools.partial(
            _agm_kernel, a=float(a), rows=rows, tile_rows=tile_rows,
            steps_per_partial=steps_per_partial, needs_mask=needs_mask,
            first_ragged_block=first_ragged_block)

        partials = pl.pallas_call(
            kernel,
            out_shape=jax.ShapeDtypeStruct((n_part * SUBLANES, LANES),
                                           jnp.float32),
            grid_spec=pltpu.PrefetchScalarGridSpec(
                num_scalar_prefetch=0,
                grid=(n_part, steps_per_partial),
                in_specs=[
                    pl.BlockSpec((tile_rows, LANES), in_map),
                    pl.BlockSpec((tile_rows, LANES), in_map),
                ],
                # Output block resident across the "arbitrary" j axis: it IS
                # the (8,128) accumulator; one HBM writeback per partial.
                out_specs=pl.BlockSpec((SUBLANES, LANES), lambda p, j: (p, 0)),
            ),
            compiler_params=pltpu.CompilerParams(
                dimension_semantics=("parallel", "arbitrary"),
            ),
        )(o2d, t2d)

        total = total + jnp.sum(partials)

    if rem:
        o_tail = jax.lax.slice(o_flat, (main,), (n_elems,))
        t_tail = jax.lax.slice(t_flat, (main,), (n_elems,))
        total = total + jnp.sum(_weighted_value(o_tail, t_tail, float(a)))

    # Mean over the ORIGINAL element count.
    return total / jnp.float32(n_elems)


def _reference(outputs, targets, a=0.1):
    o = outputs.astype(jnp.float32)
    t = targets.astype(jnp.float32)
    sigma = sqrt(2.0) / 2.0
    temp = -((o - t) ** 2) / 2.0 * sigma ** 2
    value = 1.0 - jnp.exp(temp)
    return jnp.mean(
        jnp.where(o > t, 2.0 * a * value, (2.0 - 2.0 * a) * value))


if __name__ == "__main__":
    key = jax.random.PRNGKey(0)
    k1, k2, k3, k4, k5, k6, k7, k8 = jax.random.split(key, 8)

    # Case 1: aligned NCHW input [2,4,16,16], default single-step path.
    o1 = jax.random.normal(k1, (2, 4, 16, 16), dtype=jnp.float32)
    t1 = jax.random.normal(k2, (2, 4, 16, 16), dtype=jnp.float32)
    l1 = jax.block_until_ready(asymmetric_gaussian_mse(o1, t1, a=0.1))
    assert jnp.allclose(l1, _reference(o1, t1, 0.1), atol=1e-6, rtol=1e-5), l1

    # Case 2: forced 2-way partial split with a clamped duplicate tail tile
    # (exercises both the unmasked full-block and masked tail-block branches).
    o2 = jax.random.normal(k3, (3, 4, 16, 16), dtype=jnp.float32)
    t2 = jax.random.normal(k4, (3, 4, 16, 16), dtype=jnp.float32)
    l2 = jax.block_until_ready(
        asymmetric_gaussian_mse(o2, t2, a=0.1, tile_rows=8, num_partials=2))
    assert jnp.allclose(l2, _reference(o2, t2, 0.1), atol=1e-6, rtol=1e-5), l2

    # Case 3: unaligned element count + bf16 inputs (native-dtype streaming,
    # aligned prefix through the kernel, <1024-element tail in plain jnp).
    o3 = jax.random.normal(k5, (2, 3, 17, 13), dtype=jnp.bfloat16)
    t3 = jax.random.normal(k6, (2, 3, 17, 13), dtype=jnp.bfloat16)
    l3 = jax.block_until_ready(asymmetric_gaussian_mse(o3, t3, a=0.1))
    assert jnp.allclose(l3, _reference(o3, t3, 0.1), atol=1e-5, rtol=1e-4), l3

    # Case 4: ragged last block (rows not a multiple of tile_rows) exercising
    # the gated tail-block mask on real (non-duplicated) data.
    o4 = jax.random.normal(k7, (5, 32, 32), dtype=jnp.float32)
    t4 = jax.random.normal(k8, (5, 32, 32), dtype=jnp.float32)
    l4 = jax.block_until_ready(
        asymmetric_gaussian_mse(o4, t4, a=0.1, tile_rows=16, num_partials=1))
    assert jnp.allclose(l4, _reference(o4, t4, 0.1), atol=1e-6, rtol=1e-5), l4

    print("KERNEL_OK")
</pallas_src>

<mosaic_0001>
module attributes {stable_mosaic.version = 11 : i64} {
  func.func @_agm_kernel(%arg0: i32, %arg1: i32, %arg2: memref<16x128xf32, #tpu.memory_space<vmem>>, %arg3: memref<16x128xf32, #tpu.memory_space<vmem>>, %arg4: memref<8x128xf32, #tpu.memory_space<vmem>>) attributes {dimension_semantics = [#tpu.dimension_semantics<parallel>, #tpu.dimension_semantics<arbitrary>], iteration_bounds = array<i64: 1, 1>, scalar_prefetch = 0 : i64, scratch_operands = 0 : i64, tpu.core_type = #tpu.core_type<tc>, window_params = [{transform_indices = @transform_0, window_bounds = array<i64: 16, 128>}, {transform_indices = @transform_1, window_bounds = array<i64: 16, 128>}, {transform_indices = @transform_2, window_bounds = array<i64: 8, 128>}]} {
    %c0_i32 = arith.constant 0 : i32
    %0 = arith.cmpi eq, %arg1, %c0_i32 : i32
    %1 = arith.extui %0 : i1 to i32
    %c0_i32_0 = arith.constant 0 : i32
    %2 = arith.cmpi ne, %1, %c0_i32_0 : i32
    scf.if %2 {
      %cst_13 = arith.constant 0.000000e+00 : f32
      %23 = vector.broadcast %cst_13 : f32 to vector<8x128xf32>
      %c0_14 = arith.constant 0 : index
      %c0_15 = arith.constant 0 : index
      %24 = vector.load %arg4[%c0_14, %c0_15] : memref<8x128xf32, #tpu.memory_space<vmem>>, vector<8x128xf32>
      tpu.vector_store %arg4[%c0_14, %c0_15], %23 {strides = array<i32>} : memref<8x128xf32, #tpu.memory_space<vmem>>, vector<8x128xf32>,
    } else {
    }
    %c0 = arith.constant 0 : index
    %c0_1 = arith.constant 0 : index
    %3 = vector.load %arg2[%c0, %c0_1] : memref<16x128xf32, #tpu.memory_space<vmem>>, vector<16x128xf32>
    %c0_2 = arith.constant 0 : index
    %c0_3 = arith.constant 0 : index
    %4 = vector.load %arg3[%c0_2, %c0_3] : memref<16x128xf32, #tpu.memory_space<vmem>>, vector<16x128xf32>
    %5 = arith.subf %3, %4 : vector<16x128xf32>
    %6 = arith.mulf %5, %5 : vector<16x128xf32>
    %cst = arith.constant -2.500000e-01 : f32
    %7 = vector.broadcast %cst : f32 to vector<16x128xf32>
    %8 = arith.mulf %6, %7 : vector<16x128xf32>
    %9 = math.exp %8 : vector<16x128xf32>
    %cst_4 = arith.constant 1.000000e+00 : f32
    %10 = vector.broadcast %cst_4 : f32 to vector<16x128xf32>
    %11 = arith.subf %10, %9 : vector<16x128xf32>
    %cst_5 = arith.constant 0.000000e+00 : f32
    %12 = vector.broadcast %cst_5 : f32 to vector<16x128xf32>
    %13 = arith.cmpf ogt, %5, %12 : vector<16x128xf32>
    %cst_6 = arith.constant 2.000000e-01 : f32
    %cst_7 = arith.constant 1.800000e+00 : f32
    %14 = vector.broadcast %cst_6 : f32 to vector<16x128xf32>
    %15 = vector.broadcast %cst_7 : f32 to vector<16x128xf32>
    %16 = arith.select %13, %14, %15 : vector<16x128xi1>, vector<16x128xf32>
    %17 = arith.mulf %16, %11 : vector<16x128xf32>
    %c0_8 = arith.constant 0 : index
    %c0_9 = arith.constant 0 : index
    %18 = vector.load %arg4[%c0_8, %c0_9] : memref<8x128xf32, #tpu.memory_space<vmem>>, vector<8x128xf32>
    %19 = vector.shape_cast %17 : vector<16x128xf32> to vector<2x8x128xf32>
    %cst_10 = arith.constant dense<0.000000e+00> : vector<8x128xf32>
    %20 = vector.multi_reduction <add>, %19, %cst_10 [0] : vector<2x8x128xf32> to vector<8x128xf32>
    %21 = arith.addf %18, %20 : vector<8x128xf32>
    %c0_11 = arith.constant 0 : index
    %c0_12 = arith.constant 0 : index
    %22 = vector.load %arg4[%c0_11, %c0_12] : memref<8x128xf32, #tpu.memory_space<vmem>>, vector<8x128xf32>
    tpu.vector_store %arg4[%c0_11, %c0_12], %21 {strides = array<i32>} : memref<8x128xf32, #tpu.memory_space<vmem>>, vector<8x128xf32>,
    return
  }
  func.func @transform_0(%arg0: i32, %arg1: i32) -> (i32, i32) {
    %c1_i32 = arith.constant 1 : i32
    %0 = arith.muli %arg0, %c1_i32 : i32
    %1 = arith.addi %0, %arg1 : i32
    %c0_i32 = arith.constant 0 : i32
    %2 = arith.minsi %1, %c0_i32 : i32
    %c0_i32_0 = arith.constant 0 : i32
    %c0_i32_1 = arith.constant 0 : i32
    return %2, %c0_i32_0 : i32, i32
  }
  func.func @transform_1(%arg0: i32, %arg1: i32) -> (i32, i32) {
    %c1_i32 = arith.constant 1 : i32
    %0 = arith.muli %arg0, %c1_i32 : i32
    %1 = arith.addi %0, %arg1 : i32
    %c0_i32 = arith.constant 0 : i32
    %2 = arith.minsi %1, %c0_i32 : i32
    %c0_i32_0 = arith.constant 0 : i32
    %c0_i32_1 = arith.constant 0 : i32
    return %2, %c0_i32_0 : i32, i32
  }
  func.func @transform_2(%arg0: i32, %arg1: i32) -> (i32, i32) {
    %c0_i32 = arith.constant 0 : i32
    %c0_i32_0 = arith.constant 0 : i32
    return %arg0, %c0_i32 : i32, i32
  }
}

</mosaic_0001>

<bundles_post_ra>
// kernel: tpu_custom_call.1
= control target key start
LH: loop header
LB: loop body
LE: loop exit
PB: predicated region body
PF: predicated region fallthrough
CT: control target
= control target key end

     0   :  { %7 = vsyncpa [#allocation3], 0  ;;  %s251_s0 = inlined_call_operand.hbm [shape: f32[16,128], index: 0, kind: input, shape index: {}]   ;;  %s252_s1 = inlined_call_operand.hbm [shape: f32[16,128], index: 1, kind: input, shape index: {}]   ;;  %s253_s2 = inlined_call_operand.hbm [shape: f32[8,128], index: 2, kind: output, shape index: {}]  }
   0x1   :  { %8 = vsyncpa [#allocation6], 0 }
   0x2   :  { %9 = vsyncpa [#allocation4], 0  ;;  %s194_s9 = smov [#allocation2]   ;;  %s122_s13 = scalar_lea.hbm %s251_s0, 256 }
   0x3   :  { %s21_s10 = sshll.u32 %s194_s9, 4  ;;  %p123_p0 = scmp.ne.s32.totalorder %s251_s0, %s122_s13  ;;  %s22_s10 = int_to_ptr.vmem [resolvable:$true] %s21_s10 }
   0x4   :  { %p126_p1 = scmp.lt.u32.totalorder %s122_s13, %s251_s0 }
   0x6   :  { %p128_p2 = pnand %p126_p1, %p123_p0 }
   0x8   :  { %131 = shalt.err (!%p128_p2)
}
   0x9   :  { %s132_s18 = scalar_lea.vmem %s22_s10, 256  ;;  %p137_p4 = scmp.lt.s32.totalorder %s22_s10, %s22_s10 }
   0xa   :  { %p133_p3 = scmp.ne.s32.totalorder %s22_s10, %s132_s18  ;;  %p138_p5 = scmp.lt.s32.totalorder %s132_s18, %s132_s18 }
   0xc   :  { %p139_p6 = por %p138_p5, %p137_p4 }
   0xe   :  { %p140_p7 = pnand %p139_p6, %p133_p3 }
  0x10   :  { %143 = shalt.err (!%p140_p7)
}
  0x11   :  { %s195_s19 = smov 128   ;;  %s196_s20 = smov 8  }
  0x12   :  { %27 = dma.hbm_to_vmem [thread:$0]  %s251_s0, 256, %s22_s10, [#allocation3], %s195_s19, %s195_s19, %s196_s20  }
  0x13   :  { %s197_s23 = smov [#allocation5]   ;;  %s144_s27 = scalar_lea.hbm %s252_s1, 256 }
  0x14   :  { %s39_s24 = sshll.u32 %s197_s23, 4  ;;  %p145_p8 = scmp.ne.s32.totalorder %s252_s1, %s144_s27  ;;  %s40_s24 = int_to_ptr.vmem [resolvable:$true] %s39_s24 }
  0x15   :  { %p148_p9 = scmp.lt.u32.totalorder %s144_s27, %s252_s1 }
  0x17   :  { %p150_p10 = pnand %p148_p9, %p145_p8 }
  0x19   :  { %153 = shalt.err (!%p150_p10)
}
  0x1a   :  { %s154_s4 = scalar_lea.vmem %s40_s24, 256  ;;  %p159_p12 = scmp.lt.s32.totalorder %s40_s24, %s40_s24 }
  0x1b   :  { %p155_p11 = scmp.ne.s32.totalorder %s40_s24, %s154_s4  ;;  %p160_p13 = scmp.lt.s32.totalorder %s154_s4, %s154_s4 }
  0x1d   :  { %p161_p0 = por %p160_p13, %p159_p12 }
  0x1f   :  { %p162_p1 = pnand %p161_p0, %p155_p11 }
  0x21   :  { %165 = shalt.err (!%p162_p1)
}
  0x22   :  { %45 = dma.hbm_to_vmem [thread:$0]  %s252_s1, 256, %s40_s24, [#allocation6], %s195_s19, %s195_s19, %s196_s20  }
  0x23   :  { %188 = dma.done.wait [#allocation3], 256  }
  0x24   :  { %189 = vsyncadd [#allocation3], 4294967040 }
  0x25   :  { %190 = dma.done.wait [#allocation6], 256  }
  0x26   :  { %191 = vsyncadd [#allocation6], 4294967040  ;;  %v65_v0 = vld [vmem:[#allocation2] sm:$0xff]  ;;  %v66_v1 = vld [vmem:[#allocation2 + $0x8] sm:$0xff]  ;;  %v198_v13 = vmov 1.8  }
  0x27   :  { %v67_v2 = vld [vmem:[#allocation5] sm:$0xff]  ;;  %v68_v3 = vld [vmem:[#allocation5 + $0x8] sm:$0xff]  ;;  %s199_s1 = smov [#allocation7]  }
  0x28   :  { %v69_v4 = vsub.f32 %v65_v0, %v67_v2  ;;  %v70_v5 = vsub.f32 %v66_v1, %v68_v3  ;;  %s97_s6 = sshll.u32 %s199_s1, 4  ;;  %s98_s6 = int_to_ptr.vmem [resolvable:$true] %s97_s6 }
  0x29   :  { %s166_s7 = scalar_lea.vmem %s98_s6, 128  ;;  %p171_p3 = scmp.lt.s32.totalorder %s98_s6, %s98_s6 }
  0x2a   :  { %v71_v6 = vmul.f32 %v69_v4, %v69_v4  ;;  %v72_v7 = vmul.f32 %v70_v5, %v70_v5  ;;  %vm81_vm0 = vcmp.gt.f32.partialorder %v69_v4, 0.0  ;;  %vm82_vm1 = vcmp.gt.f32.partialorder %v70_v5, 0.0  ;;  %p167_p2 = scmp.ne.s32.totalorder %s98_s6, %s166_s7  ;;  %p172_p4 = scmp.lt.s32.totalorder %s166_s7, %s166_s7 }
  0x2b   :  { %v83_v14 = vsel %vm81_vm0, 0.2, %v198_v13  ;;  %v84_v17 = vsel %vm82_vm1, 0.2, %v198_v13 }
  0x2c   :  { %v73_v8 = vmul.f32 -0.25, %v71_v6  ;;  %v74_v9 = vmul.f32 -0.25, %v72_v7  ;;  %p173_p5 = por %p172_p4, %p171_p3 }
  0x2e   :  { %v75_v10 = vmul.f32 1.442695, %v73_v8  ;;  %v77_v11 = vmul.f32 1.442695, %v74_v9  ;;  %p174_p6 = pnand %p173_p5, %p167_p2 }
  0x30   :  { %118 = vpow2.f32 %v75_v10 }
  0x31   :  { %120 = vpow2.f32 %v77_v11 }
  0x3a   :  { %v119_v12 = vpop.eup %118 }
  0x3b   :  { %v121_v15 = vpop.eup %120  ;;  %v79_v16 = vsub.f32 1.0, %v119_v12 }
  0x3c   :  { %v80_v18 = vsub.f32 1.0, %v121_v15 }
  0x3d   :  { %v85_v19 = vmul.f32 %v83_v14, %v79_v16 }
  0x3e   :  { %v86_v20 = vmul.f32 %v84_v17, %v80_v18 }
  0x40   :  { %v88_v21 = vadd.f32 %v86_v20, %v85_v19 }
  0x42   :  { %90 = vst [vmem:[#allocation7] sm:$0xff] %v88_v21 }
  0x43   :  { %177 = shalt.err (!%p174_p6)
}
  0x44   :  { %s178_s10 = scalar_lea.hbm %s253_s2, 128 }
  0x45   :  { %p179_p7 = scmp.ne.s32.totalorder %s253_s2, %s178_s10  ;;  %p182_p8 = scmp.lt.u32.totalorder %s178_s10, %s253_s2 }
  0x47   :  { %p184_p9 = pnand %p182_p8, %p179_p7 }
  0x49   :  { %187 = shalt.err (!%p184_p9)
}
  0x4a   :  { %100 = dma.vmem_to_hbm [thread:$0]  %s98_s6, 128, %s253_s2, [#allocation4]  }
  0x4b   :  { %192 = dma.done.wait [#allocation4], 128  }
  0x4c   :  { %193 = vsyncadd [#allocation4], 4294967168 }
  0x4d   :  { %104 = vsyncpa [#allocation3], 1 }
  0x4e   :  { %105 = vsyncpa [#allocation6], 1 }
  0x4f   :  { %106 = vsyncpa [#allocation4], 1 }

</bundles_post_ra>
